<compile_context>
chip_gen: v7x
topology: tpu7x:2x2x1
jax: 0.10.0
libtpu: 0.0.40
codegen_flags: <defaults>
</compile_context>

<pallas_src>
import numpy as np
import jax
import jax.numpy as jnp
from jax.experimental import pallas as pl
from jax.experimental.pallas import tpu as pltpu


def _tree_crf_loss_kernel(rows_ref,      # SMEM  (N_pad+TN,) int32  flat edge-row index per node
                          unary_ref,     # VMEM  (TN, L)            unary potentials tile
                          side_ref,      # VMEM  (TN, 4)            [label, unary_mask, child_mask, 0]
                          root_ref,      # VMEM  (1, L)             beliefs[0]
                          edge_hbm,      # ANY   (N*L, L)           edge potentials, stays in HBM
                          out_ref,       # VMEM  (1, 1)             loss
                          edge_buf,      # VMEM scratch (2, TN, L)  gathered edge rows (double buffer)
                          copy_sems,     # DMA sems (2, TN)
                          acc_ref):      # VMEM scratch (1, 1)      running potential sum
    t = pl.program_id(0)
    n_tiles = pl.num_programs(0)
    TN, L = unary_ref.shape

    def issue_tile(tile, slot):
        base = tile * TN
        for i in range(TN):
            pltpu.make_async_copy(edge_hbm.at[rows_ref[base + i]],
                                  edge_buf.at[slot, i],
                                  copy_sems.at[slot, i]).start()

    @pl.when(t == 0)
    def _():
        acc_ref[...] = jnp.zeros_like(acc_ref)
        issue_tile(0, 0)

    # prefetch next tile's selected edge rows while we compute this tile
    @pl.when(t + 1 < n_tiles)
    def _():
        issue_tile(t + 1, (t + 1) % 2)

    slot = t % 2
    for i in range(TN):
        pltpu.make_async_copy(edge_hbm.at[0], edge_buf.at[slot, i],
                              copy_sems.at[slot, i]).wait()

    # per-node label select without materialized float one-hots
    lane = jax.lax.broadcasted_iota(jnp.int32, (TN, L), 1)
    lab = side_ref[:, 0:1].astype(jnp.int32)                       # (TN, 1)
    sel = lane == lab
    u_sel = jnp.sum(jnp.where(sel, unary_ref[...], 0.0), axis=1, keepdims=True)
    e_sel = jnp.sum(jnp.where(sel, edge_buf[slot], 0.0), axis=1, keepdims=True)
    contrib = side_ref[:, 1:2] * u_sel + side_ref[:, 2:3] * e_sel  # (TN, 1)
    acc_ref[...] += jnp.sum(contrib, axis=0, keepdims=True)        # (1, 1)

    # partition term only once, in the finalize step
    @pl.when(t == n_tiles - 1)
    def _():
        b = root_ref[...]                                          # (1, L)
        m = jnp.max(b, axis=1, keepdims=True)
        z = m + jnp.log(jnp.sum(jnp.exp(b - m), axis=1, keepdims=True))
        out_ref[...] = -(acc_ref[...] - z)


def tree_crf_loss(unary_potentials, edge_potentials, beliefs, children_dict,
                  true_labels, *, tile_nodes=8):
    N, L = unary_potentials.shape
    TN = int(tile_nodes)                       # must be a multiple of 8
    n_tiles = (N + TN - 1) // TN
    N_pad = n_tiles * TN

    # --- static tree structure -> per-node masks / parent index (host glue) ---
    parent_idx = np.arange(N, dtype=np.int32)
    parent_mask = np.zeros((N,), dtype=np.float32)
    child_mask_np = np.zeros((N,), dtype=np.float32)
    for p, children in children_dict.items():
        parent_mask[p] = 1.0
        for c in children:
            child_mask_np[c] = 1.0
            parent_idx[c] = p
    leaf_child_mask = child_mask_np * (1.0 - parent_mask)
    unary_mask_np = parent_mask + leaf_child_mask   # parents once + leaf children

    labels = true_labels.astype(jnp.int32)
    parent_labels = jnp.take(labels, jnp.asarray(parent_idx), axis=0)
    # flat row index into edge viewed as (N*L, L): row = node * L + parent_label
    rows = jnp.arange(N, dtype=jnp.int32) * L + parent_labels
    # pad one extra tile so the speculative next-tile index reads stay in bounds
    rows_pad = jnp.zeros((N_pad + TN,), jnp.int32).at[:N].set(rows)

    # packed per-node sidecar: [label, unary_mask, child_mask, 0]
    side = jnp.zeros((N_pad, 4), jnp.float32)
    side = side.at[:N, 0].set(labels.astype(jnp.float32))
    side = side.at[:N, 1].set(jnp.asarray(unary_mask_np))
    side = side.at[:N, 2].set(jnp.asarray(child_mask_np))

    unary_pad = jnp.zeros((N_pad, L), jnp.float32).at[:N, :].set(
        unary_potentials.astype(jnp.float32))
    edge_flat = edge_potentials.astype(jnp.float32).reshape(N * L, L)
    root_belief = beliefs[0:1, :].astype(jnp.float32)

    grid_spec = pltpu.PrefetchScalarGridSpec(
        num_scalar_prefetch=1,
        grid=(n_tiles,),
        in_specs=[
            pl.BlockSpec((TN, L), lambda t, _pref: (t, 0)),    # unary tile
            pl.BlockSpec((TN, 4), lambda t, _pref: (t, 0)),    # packed sidecar
            pl.BlockSpec((1, L), lambda t, _pref: (0, 0)),     # root beliefs (resident)
            pl.BlockSpec(memory_space=pl.ANY),                 # edge potentials stay in HBM
        ],
        out_specs=pl.BlockSpec((1, 1), lambda t, _pref: (0, 0)),
        scratch_shapes=[
            pltpu.VMEM((2, TN, L), jnp.float32),               # gathered edge rows (dbl buffer)
            pltpu.SemaphoreType.DMA((2, TN)),
            pltpu.VMEM((1, 1), jnp.float32),                   # accumulator
        ],
    )

    out = pl.pallas_call(
        _tree_crf_loss_kernel,
        out_shape=jax.ShapeDtypeStruct((1, 1), jnp.float32),
        grid_spec=grid_spec,
        compiler_params=pltpu.CompilerParams(
            # serial accumulation over node tiles -> reduction axis
            dimension_semantics=("arbitrary",)),
    )(rows_pad, unary_pad, side, root_belief, edge_flat)
    # TODO(synk): for v7x 2-TC scaling, emit per-core partial sums over a
    # "parallel" node axis and reduce in the wrapper instead of one serial acc.
    return out[0, 0]


if __name__ == "__main__":
    key = jax.random.PRNGKey(0)
    N, L = 8, 8  # 8 tree nodes, 8 labels
    k1, k2, k3, k4 = jax.random.split(key, 4)
    unary = jax.random.normal(k1, (N, L), jnp.float32)
    edge = jax.random.normal(k2, (N, L, L), jnp.float32)
    beliefs = jax.random.normal(k3, (N, L), jnp.float32)
    true_labels = jax.random.randint(k4, (N,), 0, L, dtype=jnp.int32)
    # static tree: root 0 -> {1, 2}; 1 -> {3, 4}; 2 -> {5, 6, 7}
    children_dict = {0: [1, 2], 1: [3, 4], 2: [5, 6, 7]}

    loss = tree_crf_loss(unary, edge, beliefs, children_dict, true_labels)
    loss = jax.block_until_ready(loss)

    # pure-numpy reference mirroring the PyTorch forward exactly
    un, ed, be, tl = (np.asarray(unary), np.asarray(edge),
                      np.asarray(beliefs), np.asarray(true_labels))
    mz = be[0].max()
    z = mz + np.log(np.sum(np.exp(be[0] - mz)))
    pot = 0.0
    for p, children in children_dict.items():
        i = int(tl[p])
        pot += un[p][i]
        for c in children:
            j = int(tl[c])
            pot += ed[c][i][j]
            if c not in children_dict:
                pot += un[c][j]
    ref = -(pot - z)
    assert np.allclose(float(loss), ref, rtol=1e-5, atol=1e-5), (float(loss), ref)
    print("KERNEL_OK")
</pallas_src>

<mosaic_0001>
module attributes {stable_mosaic.version = 11 : i64} {
  func.func @_tree_crf_loss_kernel(%arg0: i32, %arg1: memref<16xi32, #tpu.memory_space<smem>>, %arg2: memref<8x8xf32, #tpu.memory_space<vmem>>, %arg3: memref<8x4xf32, #tpu.memory_space<vmem>>, %arg4: memref<1x8xf32, #tpu.memory_space<vmem>>, %arg5: memref<64x8xf32, #tpu.memory_space<any>>, %arg6: memref<1x1xf32, #tpu.memory_space<vmem>>, %arg7: memref<2x8x8xf32, #tpu.memory_space<vmem>>, %arg8: memref<2x8x!tpu.dma_semaphore, #tpu.memory_space<semaphore_mem>>, %arg9: memref<1x1xf32, #tpu.memory_space<vmem>>) attributes {dimension_semantics = [#tpu.dimension_semantics<arbitrary>], iteration_bounds = array<i64: 1>, scalar_prefetch = 1 : i64, scratch_operands = 3 : i64, tpu.core_type = #tpu.core_type<tc>, window_params = [{transform_indices = @transform_0, window_bounds = array<i64: 8, 8>}, {transform_indices = @transform_1, window_bounds = array<i64: 8, 4>}, {pipeline_mode = #tpu.pipeline_mode<synchronous>, transform_indices = @transform_2, window_bounds = array<i64: 1, 8>}, {}, {pipeline_mode = #tpu.pipeline_mode<synchronous>, transform_indices = @transform_4, window_bounds = array<i64: 1, 1>}]} {
    %c0_i32 = arith.constant 0 : i32
    %0 = arith.cmpi eq, %arg0, %c0_i32 : i32
    %1 = arith.extui %0 : i1 to i32
    %c0_i32_0 = arith.constant 0 : i32
    %2 = arith.cmpi ne, %1, %c0_i32_0 : i32
    scf.if %2 {
      %cst_60 = arith.constant 0.000000e+00 : f32
      %95 = vector.broadcast %cst_60 : f32 to vector<1x1xf32>
      %c0_61 = arith.constant 0 : index
      %c0_62 = arith.constant 0 : index
      %96 = vector.load %arg9[%c0_61, %c0_62] : memref<1x1xf32, #tpu.memory_space<vmem>>, vector<1x1xf32>
      tpu.vector_store %arg9[%c0_61, %c0_62], %95 {strides = array<i32>} : memref<1x1xf32, #tpu.memory_space<vmem>>, vector<1x1xf32>,
      %c0_63 = arith.constant 0 : index
      %97 = memref.load %arg1[%c0_63] : memref<16xi32, #tpu.memory_space<smem>>
      %c0_i32_64 = arith.constant 0 : i32
      %c0_i32_65 = arith.constant 0 : i32
      %c0_i32_66 = arith.constant 0 : i32
      %c0_i32_67 = arith.constant 0 : i32
      %c0_i32_68 = arith.constant 0 : i32
      %98 = tpu.memref_slice %arg5[%97, %c0_i32_68] : memref<64x8xf32, #tpu.memory_space<any>> -> memref<1x8xf32, #tpu.memory_space<any>>
      %99 = tpu.memref_squeeze %98 : memref<1x8xf32, #tpu.memory_space<any>> -> memref<8xf32, #tpu.memory_space<any>>
      %c0_i32_69 = arith.constant 0 : i32
      %100 = tpu.memref_slice %arg7[%c0_i32_64, %c0_i32_65, %c0_i32_69] : memref<2x8x8xf32, #tpu.memory_space<vmem>> -> memref<1x1x8xf32, #tpu.memory_space<vmem>>
      %101 = tpu.memref_squeeze %100 : memref<1x1x8xf32, #tpu.memory_space<vmem>> -> memref<8xf32, #tpu.memory_space<vmem>>
      %102 = tpu.memref_slice %arg8[%c0_i32_66, %c0_i32_67] : memref<2x8x!tpu.dma_semaphore, #tpu.memory_space<semaphore_mem>> -> memref<1x1x!tpu.dma_semaphore, #tpu.memory_space<semaphore_mem>>
      %103 = tpu.memref_squeeze %102 : memref<1x1x!tpu.dma_semaphore, #tpu.memory_space<semaphore_mem>> -> memref<!tpu.dma_semaphore, #tpu.memory_space<semaphore_mem>>
      tpu.enqueue_dma source(%99 : memref<8xf32, #tpu.memory_space<any>>) target(%101 : memref<8xf32, #tpu.memory_space<vmem>>) target_semaphore(%103 : memref<!tpu.dma_semaphore, #tpu.memory_space<semaphore_mem>>)
      %c1_70 = arith.constant 1 : index
      %104 = memref.load %arg1[%c1_70] : memref<16xi32, #tpu.memory_space<smem>>
      %c0_i32_71 = arith.constant 0 : i32
      %c1_i32_72 = arith.constant 1 : i32
      %c0_i32_73 = arith.constant 0 : i32
      %c1_i32_74 = arith.constant 1 : i32
      %c0_i32_75 = arith.constant 0 : i32
      %105 = tpu.memref_slice %arg5[%104, %c0_i32_75] : memref<64x8xf32, #tpu.memory_space<any>> -> memref<1x8xf32, #tpu.memory_space<any>>
      %106 = tpu.memref_squeeze %105 : memref<1x8xf32, #tpu.memory_space<any>> -> memref<8xf32, #tpu.memory_space<any>>
      %c0_i32_76 = arith.constant 0 : i32
      %107 = tpu.memref_slice %arg7[%c0_i32_71, %c1_i32_72, %c0_i32_76] : memref<2x8x8xf32, #tpu.memory_space<vmem>> -> memref<1x1x8xf32, #tpu.memory_space<vmem>>
      %108 = tpu.memref_squeeze %107 : memref<1x1x8xf32, #tpu.memory_space<vmem>> -> memref<8xf32, #tpu.memory_space<vmem>>
      %109 = tpu.memref_slice %arg8[%c0_i32_73, %c1_i32_74] : memref<2x8x!tpu.dma_semaphore, #tpu.memory_space<semaphore_mem>> -> memref<1x1x!tpu.dma_semaphore, #tpu.memory_space<semaphore_mem>>
      %110 = tpu.memref_squeeze %109 : memref<1x1x!tpu.dma_semaphore, #tpu.memory_space<semaphore_mem>> -> memref<!tpu.dma_semaphore, #tpu.memory_space<semaphore_mem>>
      tpu.enqueue_dma source(%106 : memref<8xf32, #tpu.memory_space<any>>) target(%108 : memref<8xf32, #tpu.memory_space<vmem>>) target_semaphore(%110 : memref<!tpu.dma_semaphore, #tpu.memory_space<semaphore_mem>>)
      %c2_77 = arith.constant 2 : index
      %111 = memref.load %arg1[%c2_77] : memref<16xi32, #tpu.memory_space<smem>>
      %c0_i32_78 = arith.constant 0 : i32
      %c2_i32_79 = arith.constant 2 : i32
      %c0_i32_80 = arith.constant 0 : i32
      %c2_i32_81 = arith.constant 2 : i32
      %c0_i32_82 = arith.constant 0 : i32
      %112 = tpu.memref_slice %arg5[%111, %c0_i32_82] : memref<64x8xf32, #tpu.memory_space<any>> -> memref<1x8xf32, #tpu.memory_space<any>>
      %113 = tpu.memref_squeeze %112 : memref<1x8xf32, #tpu.memory_space<any>> -> memref<8xf32, #tpu.memory_space<any>>
      %c0_i32_83 = arith.constant 0 : i32
      %114 = tpu.memref_slice %arg7[%c0_i32_78, %c2_i32_79, %c0_i32_83] : memref<2x8x8xf32, #tpu.memory_space<vmem>> -> memref<1x1x8xf32, #tpu.memory_space<vmem>>
      %115 = tpu.memref_squeeze %114 : memref<1x1x8xf32, #tpu.memory_space<vmem>> -> memref<8xf32, #tpu.memory_space<vmem>>
      %116 = tpu.memref_slice %arg8[%c0_i32_80, %c2_i32_81] : memref<2x8x!tpu.dma_semaphore, #tpu.memory_space<semaphore_mem>> -> memref<1x1x!tpu.dma_semaphore, #tpu.memory_space<semaphore_mem>>
      %117 = tpu.memref_squeeze %116 : memref<1x1x!tpu.dma_semaphore, #tpu.memory_space<semaphore_mem>> -> memref<!tpu.dma_semaphore, #tpu.memory_space<semaphore_mem>>
      tpu.enqueue_dma source(%113 : memref<8xf32, #tpu.memory_space<any>>) target(%115 : memref<8xf32, #tpu.memory_space<vmem>>) target_semaphore(%117 : memref<!tpu.dma_semaphore, #tpu.memory_space<semaphore_mem>>)
      %c3 = arith.constant 3 : index
      %118 = memref.load %arg1[%c3] : memref<16xi32, #tpu.memory_space<smem>>
      %c0_i32_84 = arith.constant 0 : i32
      %c3_i32_85 = arith.constant 3 : i32
      %c0_i32_86 = arith.constant 0 : i32
      %c3_i32_87 = arith.constant 3 : i32
      %c0_i32_88 = arith.constant 0 : i32
      %119 = tpu.memref_slice %arg5[%118, %c0_i32_88] : memref<64x8xf32, #tpu.memory_space<any>> -> memref<1x8xf32, #tpu.memory_space<any>>
      %120 = tpu.memref_squeeze %119 : memref<1x8xf32, #tpu.memory_space<any>> -> memref<8xf32, #tpu.memory_space<any>>
      %c0_i32_89 = arith.constant 0 : i32
      %121 = tpu.memref_slice %arg7[%c0_i32_84, %c3_i32_85, %c0_i32_89] : memref<2x8x8xf32, #tpu.memory_space<vmem>> -> memref<1x1x8xf32, #tpu.memory_space<vmem>>
      %122 = tpu.memref_squeeze %121 : memref<1x1x8xf32, #tpu.memory_space<vmem>> -> memref<8xf32, #tpu.memory_space<vmem>>
      %123 = tpu.memref_slice %arg8[%c0_i32_86, %c3_i32_87] : memref<2x8x!tpu.dma_semaphore, #tpu.memory_space<semaphore_mem>> -> memref<1x1x!tpu.dma_semaphore, #tpu.memory_space<semaphore_mem>>
      %124 = tpu.memref_squeeze %123 : memref<1x1x!tpu.dma_semaphore, #tpu.memory_space<semaphore_mem>> -> memref<!tpu.dma_semaphore, #tpu.memory_space<semaphore_mem>>
      tpu.enqueue_dma source(%120 : memref<8xf32, #tpu.memory_space<any>>) target(%122 : memref<8xf32, #tpu.memory_space<vmem>>) target_semaphore(%124 : memref<!tpu.dma_semaphore, #tpu.memory_space<semaphore_mem>>)
      %c4 = arith.constant 4 : index
      %125 = memref.load %arg1[%c4] : memref<16xi32, #tpu.memory_space<smem>>
      %c0_i32_90 = arith.constant 0 : i32
      %c4_i32_91 = arith.constant 4 : i32
      %c0_i32_92 = arith.constant 0 : i32
      %c4_i32_93 = arith.constant 4 : i32
      %c0_i32_94 = arith.constant 0 : i32
      %126 = tpu.memref_slice %arg5[%125, %c0_i32_94] : memref<64x8xf32, #tpu.memory_space<any>> -> memref<1x8xf32, #tpu.memory_space<any>>
      %127 = tpu.memref_squeeze %126 : memref<1x8xf32, #tpu.memory_space<any>> -> memref<8xf32, #tpu.memory_space<any>>
      %c0_i32_95 = arith.constant 0 : i32
      %128 = tpu.memref_slice %arg7[%c0_i32_90, %c4_i32_91, %c0_i32_95] : memref<2x8x8xf32, #tpu.memory_space<vmem>> -> memref<1x1x8xf32, #tpu.memory_space<vmem>>
      %129 = tpu.memref_squeeze %128 : memref<1x1x8xf32, #tpu.memory_space<vmem>> -> memref<8xf32, #tpu.memory_space<vmem>>
      %130 = tpu.memref_slice %arg8[%c0_i32_92, %c4_i32_93] : memref<2x8x!tpu.dma_semaphore, #tpu.memory_space<semaphore_mem>> -> memref<1x1x!tpu.dma_semaphore, #tpu.memory_space<semaphore_mem>>
      %131 = tpu.memref_squeeze %130 : memref<1x1x!tpu.dma_semaphore, #tpu.memory_space<semaphore_mem>> -> memref<!tpu.dma_semaphore, #tpu.memory_space<semaphore_mem>>
      tpu.enqueue_dma source(%127 : memref<8xf32, #tpu.memory_space<any>>) target(%129 : memref<8xf32, #tpu.memory_space<vmem>>) target_semaphore(%131 : memref<!tpu.dma_semaphore, #tpu.memory_space<semaphore_mem>>)
      %c5 = arith.constant 5 : index
      %132 = memref.load %arg1[%c5] : memref<16xi32, #tpu.memory_space<smem>>
      %c0_i32_96 = arith.constant 0 : i32
      %c5_i32_97 = arith.constant 5 : i32
      %c0_i32_98 = arith.constant 0 : i32
      %c5_i32_99 = arith.constant 5 : i32
      %c0_i32_100 = arith.constant 0 : i32
      %133 = tpu.memref_slice %arg5[%132, %c0_i32_100] : memref<64x8xf32, #tpu.memory_space<any>> -> memref<1x8xf32, #tpu.memory_space<any>>
      %134 = tpu.memref_squeeze %133 : memref<1x8xf32, #tpu.memory_space<any>> -> memref<8xf32, #tpu.memory_space<any>>
      %c0_i32_101 = arith.constant 0 : i32
      %135 = tpu.memref_slice %arg7[%c0_i32_96, %c5_i32_97, %c0_i32_101] : memref<2x8x8xf32, #tpu.memory_space<vmem>> -> memref<1x1x8xf32, #tpu.memory_space<vmem>>
      %136 = tpu.memref_squeeze %135 : memref<1x1x8xf32, #tpu.memory_space<vmem>> -> memref<8xf32, #tpu.memory_space<vmem>>
      %137 = tpu.memref_slice %arg8[%c0_i32_98, %c5_i32_99] : memref<2x8x!tpu.dma_semaphore, #tpu.memory_space<semaphore_mem>> -> memref<1x1x!tpu.dma_semaphore, #tpu.memory_space<semaphore_mem>>
      %138 = tpu.memref_squeeze %137 : memref<1x1x!tpu.dma_semaphore, #tpu.memory_space<semaphore_mem>> -> memref<!tpu.dma_semaphore, #tpu.memory_space<semaphore_mem>>
      tpu.enqueue_dma source(%134 : memref<8xf32, #tpu.memory_space<any>>) target(%136 : memref<8xf32, #tpu.memory_space<vmem>>) target_semaphore(%138 : memref<!tpu.dma_semaphore, #tpu.memory_space<semaphore_mem>>)
      %c6 = arith.constant 6 : index
      %139 = memref.load %arg1[%c6] : memref<16xi32, #tpu.memory_space<smem>>
      %c0_i32_102 = arith.constant 0 : i32
      %c6_i32_103 = arith.constant 6 : i32
      %c0_i32_104 = arith.constant 0 : i32
      %c6_i32_105 = arith.constant 6 : i32
      %c0_i32_106 = arith.constant 0 : i32
      %140 = tpu.memref_slice %arg5[%139, %c0_i32_106] : memref<64x8xf32, #tpu.memory_space<any>> -> memref<1x8xf32, #tpu.memory_space<any>>
      %141 = tpu.memref_squeeze %140 : memref<1x8xf32, #tpu.memory_space<any>> -> memref<8xf32, #tpu.memory_space<any>>
      %c0_i32_107 = arith.constant 0 : i32
      %142 = tpu.memref_slice %arg7[%c0_i32_102, %c6_i32_103, %c0_i32_107] : memref<2x8x8xf32, #tpu.memory_space<vmem>> -> memref<1x1x8xf32, #tpu.memory_space<vmem>>
      %143 = tpu.memref_squeeze %142 : memref<1x1x8xf32, #tpu.memory_space<vmem>> -> memref<8xf32, #tpu.memory_space<vmem>>
      %144 = tpu.memref_slice %arg8[%c0_i32_104, %c6_i32_105] : memref<2x8x!tpu.dma_semaphore, #tpu.memory_space<semaphore_mem>> -> memref<1x1x!tpu.dma_semaphore, #tpu.memory_space<semaphore_mem>>
      %145 = tpu.memref_squeeze %144 : memref<1x1x!tpu.dma_semaphore, #tpu.memory_space<semaphore_mem>> -> memref<!tpu.dma_semaphore, #tpu.memory_space<semaphore_mem>>
      tpu.enqueue_dma source(%141 : memref<8xf32, #tpu.memory_space<any>>) target(%143 : memref<8xf32, #tpu.memory_space<vmem>>) target_semaphore(%145 : memref<!tpu.dma_semaphore, #tpu.memory_space<semaphore_mem>>)
      %c7 = arith.constant 7 : index
      %146 = memref.load %arg1[%c7] : memref<16xi32, #tpu.memory_space<smem>>
      %c0_i32_108 = arith.constant 0 : i32
      %c7_i32_109 = arith.constant 7 : i32
      %c0_i32_110 = arith.constant 0 : i32
      %c7_i32_111 = arith.constant 7 : i32
      %c0_i32_112 = arith.constant 0 : i32
      %147 = tpu.memref_slice %arg5[%146, %c0_i32_112] : memref<64x8xf32, #tpu.memory_space<any>> -> memref<1x8xf32, #tpu.memory_space<any>>
      %148 = tpu.memref_squeeze %147 : memref<1x8xf32, #tpu.memory_space<any>> -> memref<8xf32, #tpu.memory_space<any>>
      %c0_i32_113 = arith.constant 0 : i32
      %149 = tpu.memref_slice %arg7[%c0_i32_108, %c7_i32_109, %c0_i32_113] : memref<2x8x8xf32, #tpu.memory_space<vmem>> -> memref<1x1x8xf32, #tpu.memory_space<vmem>>
      %150 = tpu.memref_squeeze %149 : memref<1x1x8xf32, #tpu.memory_space<vmem>> -> memref<8xf32, #tpu.memory_space<vmem>>
      %151 = tpu.memref_slice %arg8[%c0_i32_110, %c7_i32_111] : memref<2x8x!tpu.dma_semaphore, #tpu.memory_space<semaphore_mem>> -> memref<1x1x!tpu.dma_semaphore, #tpu.memory_space<semaphore_mem>>
      %152 = tpu.memref_squeeze %151 : memref<1x1x!tpu.dma_semaphore, #tpu.memory_space<semaphore_mem>> -> memref<!tpu.dma_semaphore, #tpu.memory_space<semaphore_mem>>
      tpu.enqueue_dma source(%148 : memref<8xf32, #tpu.memory_space<any>>) target(%150 : memref<8xf32, #tpu.memory_space<vmem>>) target_semaphore(%152 : memref<!tpu.dma_semaphore, #tpu.memory_space<semaphore_mem>>)
    } else {
    }
    %c1_i32 = arith.constant 1 : i32
    %3 = arith.addi %arg0, %c1_i32 : i32
    %c1_i32_1 = arith.constant 1 : i32
    %4 = arith.cmpi slt, %3, %c1_i32_1 : i32
    %5 = arith.extui %4 : i1 to i32
    %c0_i32_2 = arith.constant 0 : i32
    %6 = arith.cmpi ne, %5, %c0_i32_2 : i32
    scf.if %6 {
      %c1_i32_60 = arith.constant 1 : i32
      %95 = arith.addi %arg0, %c1_i32_60 : i32
      %c1_i32_61 = arith.constant 1 : i32
      %96 = arith.addi %arg0, %c1_i32_61 : i32
      %c2_i32_62 = arith.constant 2 : i32
      %c0_i32_63 = arith.constant 0 : i32
      %97 = arith.cmpi eq, %c2_i32_62, %c0_i32_63 : i32
      %c1_i32_64 = arith.constant 1 : i32
      %98 = arith.select %97, %c1_i32_64, %c2_i32_62 : i32
      %99 = arith.remsi %96, %98 : i32
      %c0_i32_65 = arith.constant 0 : i32
      %100 = arith.cmpi ne, %99, %c0_i32_65 : i32
      %c0_i32_66 = arith.constant 0 : i32
      %101 = arith.cmpi slt, %99, %c0_i32_66 : i32
      %c0_i32_67 = arith.constant 0 : i32
      %102 = arith.cmpi slt, %98, %c0_i32_67 : i32
      %103 = arith.xori %101, %102 : i1
      %104 = arith.andi %103, %100 : i1
      %105 = arith.addi %99, %98 : i32
      %106 = arith.select %104, %105, %99 : i32
      %c8_i32 = arith.constant 8 : i32
      %107 = arith.muli %95, %c8_i32 : i32
      %c0_i32_68 = arith.constant 0 : i32
      %108 = arith.addi %107, %c0_i32_68 : i32
      %109 = arith.index_cast %108 : i32 to index
      %110 = memref.load %arg1[%109] : memref<16xi32, #tpu.memory_space<smem>>
      %c0_i32_69 = arith.constant 0 : i32
      %c0_i32_70 = arith.constant 0 : i32
      %c0_i32_71 = arith.constant 0 : i32
      %111 = tpu.memref_slice %arg5[%110, %c0_i32_71] : memref<64x8xf32, #tpu.memory_space<any>> -> memref<1x8xf32, #tpu.memory_space<any>>
      %112 = tpu.memref_squeeze %111 : memref<1x8xf32, #tpu.memory_space<any>> -> memref<8xf32, #tpu.memory_space<any>>
      %c0_i32_72 = arith.constant 0 : i32
      %113 = tpu.memref_slice %arg7[%106, %c0_i32_69, %c0_i32_72] : memref<2x8x8xf32, #tpu.memory_space<vmem>> -> memref<1x1x8xf32, #tpu.memory_space<vmem>>
      %114 = tpu.memref_squeeze %113 : memref<1x1x8xf32, #tpu.memory_space<vmem>> -> memref<8xf32, #tpu.memory_space<vmem>>
      %115 = tpu.memref_slice %arg8[%106, %c0_i32_70] : memref<2x8x!tpu.dma_semaphore, #tpu.memory_space<semaphore_mem>> -> memref<1x1x!tpu.dma_semaphore, #tpu.memory_space<semaphore_mem>>
      %116 = tpu.memref_squeeze %115 : memref<1x1x!tpu.dma_semaphore, #tpu.memory_space<semaphore_mem>> -> memref<!tpu.dma_semaphore, #tpu.memory_space<semaphore_mem>>
      tpu.enqueue_dma source(%112 : memref<8xf32, #tpu.memory_space<any>>) target(%114 : memref<8xf32, #tpu.memory_space<vmem>>) target_semaphore(%116 : memref<!tpu.dma_semaphore, #tpu.memory_space<semaphore_mem>>)
      %c1_i32_73 = arith.constant 1 : i32
      %117 = arith.addi %107, %c1_i32_73 : i32
      %118 = arith.index_cast %117 : i32 to index
      %119 = memref.load %arg1[%118] : memref<16xi32, #tpu.memory_space<smem>>
      %c1_i32_74 = arith.constant 1 : i32
      %c1_i32_75 = arith.constant 1 : i32
      %c0_i32_76 = arith.constant 0 : i32
      %120 = tpu.memref_slice %arg5[%119, %c0_i32_76] : memref<64x8xf32, #tpu.memory_space<any>> -> memref<1x8xf32, #tpu.memory_space<any>>
      %121 = tpu.memref_squeeze %120 : memref<1x8xf32, #tpu.memory_space<any>> -> memref<8xf32, #tpu.memory_space<any>>
      %c0_i32_77 = arith.constant 0 : i32
      %122 = tpu.memref_slice %arg7[%106, %c1_i32_74, %c0_i32_77] : memref<2x8x8xf32, #tpu.memory_space<vmem>> -> memref<1x1x8xf32, #tpu.memory_space<vmem>>
      %123 = tpu.memref_squeeze %122 : memref<1x1x8xf32, #tpu.memory_space<vmem>> -> memref<8xf32, #tpu.memory_space<vmem>>
      %124 = tpu.memref_slice %arg8[%106, %c1_i32_75] : memref<2x8x!tpu.dma_semaphore, #tpu.memory_space<semaphore_mem>> -> memref<1x1x!tpu.dma_semaphore, #tpu.memory_space<semaphore_mem>>
      %125 = tpu.memref_squeeze %124 : memref<1x1x!tpu.dma_semaphore, #tpu.memory_space<semaphore_mem>> -> memref<!tpu.dma_semaphore, #tpu.memory_space<semaphore_mem>>
      tpu.enqueue_dma source(%121 : memref<8xf32, #tpu.memory_space<any>>) target(%123 : memref<8xf32, #tpu.memory_space<vmem>>) target_semaphore(%125 : memref<!tpu.dma_semaphore, #tpu.memory_space<semaphore_mem>>)
      %c2_i32_78 = arith.constant 2 : i32
      %126 = arith.addi %107, %c2_i32_78 : i32
      %127 = arith.index_cast %126 : i32 to index
      %128 = memref.load %arg1[%127] : memref<16xi32, #tpu.memory_space<smem>>
      %c2_i32_79 = arith.constant 2 : i32
      %c2_i32_80 = arith.constant 2 : i32
      %c0_i32_81 = arith.constant 0 : i32
      %129 = tpu.memref_slice %arg5[%128, %c0_i32_81] : memref<64x8xf32, #tpu.memory_space<any>> -> memref<1x8xf32, #tpu.memory_space<any>>
      %130 = tpu.memref_squeeze %129 : memref<1x8xf32, #tpu.memory_space<any>> -> memref<8xf32, #tpu.memory_space<any>>
      %c0_i32_82 = arith.constant 0 : i32
      %131 = tpu.memref_slice %arg7[%106, %c2_i32_79, %c0_i32_82] : memref<2x8x8xf32, #tpu.memory_space<vmem>> -> memref<1x1x8xf32, #tpu.memory_space<vmem>>
      %132 = tpu.memref_squeeze %131 : memref<1x1x8xf32, #tpu.memory_space<vmem>> -> memref<8xf32, #tpu.memory_space<vmem>>
      %133 = tpu.memref_slice %arg8[%106, %c2_i32_80] : memref<2x8x!tpu.dma_semaphore, #tpu.memory_space<semaphore_mem>> -> memref<1x1x!tpu.dma_semaphore, #tpu.memory_space<semaphore_mem>>
      %134 = tpu.memref_squeeze %133 : memref<1x1x!tpu.dma_semaphore, #tpu.memory_space<semaphore_mem>> -> memref<!tpu.dma_semaphore, #tpu.memory_space<semaphore_mem>>
      tpu.enqueue_dma source(%130 : memref<8xf32, #tpu.memory_space<any>>) target(%132 : memref<8xf32, #tpu.memory_space<vmem>>) target_semaphore(%134 : memref<!tpu.dma_semaphore, #tpu.memory_space<semaphore_mem>>)
      %c3_i32_83 = arith.constant 3 : i32
      %135 = arith.addi %107, %c3_i32_83 : i32
      %136 = arith.index_cast %135 : i32 to index
      %137 = memref.load %arg1[%136] : memref<16xi32, #tpu.memory_space<smem>>
      %c3_i32_84 = arith.constant 3 : i32
      %c3_i32_85 = arith.constant 3 : i32
      %c0_i32_86 = arith.constant 0 : i32
      %138 = tpu.memref_slice %arg5[%137, %c0_i32_86] : memref<64x8xf32, #tpu.memory_space<any>> -> memref<1x8xf32, #tpu.memory_space<any>>
      %139 = tpu.memref_squeeze %138 : memref<1x8xf32, #tpu.memory_space<any>> -> memref<8xf32, #tpu.memory_space<any>>
      %c0_i32_87 = arith.constant 0 : i32
      %140 = tpu.memref_slice %arg7[%106, %c3_i32_84, %c0_i32_87] : memref<2x8x8xf32, #tpu.memory_space<vmem>> -> memref<1x1x8xf32, #tpu.memory_space<vmem>>
      %141 = tpu.memref_squeeze %140 : memref<1x1x8xf32, #tpu.memory_space<vmem>> -> memref<8xf32, #tpu.memory_space<vmem>>
      %142 = tpu.memref_slice %arg8[%106, %c3_i32_85] : memref<2x8x!tpu.dma_semaphore, #tpu.memory_space<semaphore_mem>> -> memref<1x1x!tpu.dma_semaphore, #tpu.memory_space<semaphore_mem>>
      %143 = tpu.memref_squeeze %142 : memref<1x1x!tpu.dma_semaphore, #tpu.memory_space<semaphore_mem>> -> memref<!tpu.dma_semaphore, #tpu.memory_space<semaphore_mem>>
      tpu.enqueue_dma source(%139 : memref<8xf32, #tpu.memory_space<any>>) target(%141 : memref<8xf32, #tpu.memory_space<vmem>>) target_semaphore(%143 : memref<!tpu.dma_semaphore, #tpu.memory_space<semaphore_mem>>)
      %c4_i32_88 = arith.constant 4 : i32
      %144 = arith.addi %107, %c4_i32_88 : i32
      %145 = arith.index_cast %144 : i32 to index
      %146 = memref.load %arg1[%145] : memref<16xi32, #tpu.memory_space<smem>>
      %c4_i32_89 = arith.constant 4 : i32
      %c4_i32_90 = arith.constant 4 : i32
      %c0_i32_91 = arith.constant 0 : i32
      %147 = tpu.memref_slice %arg5[%146, %c0_i32_91] : memref<64x8xf32, #tpu.memory_space<any>> -> memref<1x8xf32, #tpu.memory_space<any>>
      %148 = tpu.memref_squeeze %147 : memref<1x8xf32, #tpu.memory_space<any>> -> memref<8xf32, #tpu.memory_space<any>>
      %c0_i32_92 = arith.constant 0 : i32
      %149 = tpu.memref_slice %arg7[%106, %c4_i32_89, %c0_i32_92] : memref<2x8x8xf32, #tpu.memory_space<vmem>> -> memref<1x1x8xf32, #tpu.memory_space<vmem>>
      %150 = tpu.memref_squeeze %149 : memref<1x1x8xf32, #tpu.memory_space<vmem>> -> memref<8xf32, #tpu.memory_space<vmem>>
      %151 = tpu.memref_slice %arg8[%106, %c4_i32_90] : memref<2x8x!tpu.dma_semaphore, #tpu.memory_space<semaphore_mem>> -> memref<1x1x!tpu.dma_semaphore, #tpu.memory_space<semaphore_mem>>
      %152 = tpu.memref_squeeze %151 : memref<1x1x!tpu.dma_semaphore, #tpu.memory_space<semaphore_mem>> -> memref<!tpu.dma_semaphore, #tpu.memory_space<semaphore_mem>>
      tpu.enqueue_dma source(%148 : memref<8xf32, #tpu.memory_space<any>>) target(%150 : memref<8xf32, #tpu.memory_space<vmem>>) target_semaphore(%152 : memref<!tpu.dma_semaphore, #tpu.memory_space<semaphore_mem>>)
      %c5_i32_93 = arith.constant 5 : i32
      %153 = arith.addi %107, %c5_i32_93 : i32
      %154 = arith.index_cast %153 : i32 to index
      %155 = memref.load %arg1[%154] : memref<16xi32, #tpu.memory_space<smem>>
      %c5_i32_94 = arith.constant 5 : i32
      %c5_i32_95 = arith.constant 5 : i32
      %c0_i32_96 = arith.constant 0 : i32
      %156 = tpu.memref_slice %arg5[%155, %c0_i32_96] : memref<64x8xf32, #tpu.memory_space<any>> -> memref<1x8xf32, #tpu.memory_space<any>>
      %157 = tpu.memref_squeeze %156 : memref<1x8xf32, #tpu.memory_space<any>> -> memref<8xf32, #tpu.memory_space<any>>
      %c0_i32_97 = arith.constant 0 : i32
      %158 = tpu.memref_slice %arg7[%106, %c5_i32_94, %c0_i32_97] : memref<2x8x8xf32, #tpu.memory_space<vmem>> -> memref<1x1x8xf32, #tpu.memory_space<vmem>>
      %159 = tpu.memref_squeeze %158 : memref<1x1x8xf32, #tpu.memory_space<vmem>> -> memref<8xf32, #tpu.memory_space<vmem>>
      %160 = tpu.memref_slice %arg8[%106, %c5_i32_95] : memref<2x8x!tpu.dma_semaphore, #tpu.memory_space<semaphore_mem>> -> memref<1x1x!tpu.dma_semaphore, #tpu.memory_space<semaphore_mem>>
      %161 = tpu.memref_squeeze %160 : memref<1x1x!tpu.dma_semaphore, #tpu.memory_space<semaphore_mem>> -> memref<!tpu.dma_semaphore, #tpu.memory_space<semaphore_mem>>
      tpu.enqueue_dma source(%157 : memref<8xf32, #tpu.memory_space<any>>) target(%159 : memref<8xf32, #tpu.memory_space<vmem>>) target_semaphore(%161 : memref<!tpu.dma_semaphore, #tpu.memory_space<semaphore_mem>>)
      %c6_i32_98 = arith.constant 6 : i32
      %162 = arith.addi %107, %c6_i32_98 : i32
      %163 = arith.index_cast %162 : i32 to index
      %164 = memref.load %arg1[%163] : memref<16xi32, #tpu.memory_space<smem>>
      %c6_i32_99 = arith.constant 6 : i32
      %c6_i32_100 = arith.constant 6 : i32
      %c0_i32_101 = arith.constant 0 : i32
      %165 = tpu.memref_slice %arg5[%164, %c0_i32_101] : memref<64x8xf32, #tpu.memory_space<any>> -> memref<1x8xf32, #tpu.memory_space<any>>
      %166 = tpu.memref_squeeze %165 : memref<1x8xf32, #tpu.memory_space<any>> -> memref<8xf32, #tpu.memory_space<any>>
      %c0_i32_102 = arith.constant 0 : i32
      %167 = tpu.memref_slice %arg7[%106, %c6_i32_99, %c0_i32_102] : memref<2x8x8xf32, #tpu.memory_space<vmem>> -> memref<1x1x8xf32, #tpu.memory_space<vmem>>
      %168 = tpu.memref_squeeze %167 : memref<1x1x8xf32, #tpu.memory_space<vmem>> -> memref<8xf32, #tpu.memory_space<vmem>>
      %169 = tpu.memref_slice %arg8[%106, %c6_i32_100] : memref<2x8x!tpu.dma_semaphore, #tpu.memory_space<semaphore_mem>> -> memref<1x1x!tpu.dma_semaphore, #tpu.memory_space<semaphore_mem>>
      %170 = tpu.memref_squeeze %169 : memref<1x1x!tpu.dma_semaphore, #tpu.memory_space<semaphore_mem>> -> memref<!tpu.dma_semaphore, #tpu.memory_space<semaphore_mem>>
      tpu.enqueue_dma source(%166 : memref<8xf32, #tpu.memory_space<any>>) target(%168 : memref<8xf32, #tpu.memory_space<vmem>>) target_semaphore(%170 : memref<!tpu.dma_semaphore, #tpu.memory_space<semaphore_mem>>)
      %c7_i32_103 = arith.constant 7 : i32
      %171 = arith.addi %107, %c7_i32_103 : i32
      %172 = arith.index_cast %171 : i32 to index
      %173 = memref.load %arg1[%172] : memref<16xi32, #tpu.memory_space<smem>>
      %c7_i32_104 = arith.constant 7 : i32
      %c7_i32_105 = arith.constant 7 : i32
      %c0_i32_106 = arith.constant 0 : i32
      %174 = tpu.memref_slice %arg5[%173, %c0_i32_106] : memref<64x8xf32, #tpu.memory_space<any>> -> memref<1x8xf32, #tpu.memory_space<any>>
      %175 = tpu.memref_squeeze %174 : memref<1x8xf32, #tpu.memory_space<any>> -> memref<8xf32, #tpu.memory_space<any>>
      %c0_i32_107 = arith.constant 0 : i32
      %176 = tpu.memref_slice %arg7[%106, %c7_i32_104, %c0_i32_107] : memref<2x8x8xf32, #tpu.memory_space<vmem>> -> memref<1x1x8xf32, #tpu.memory_space<vmem>>
      %177 = tpu.memref_squeeze %176 : memref<1x1x8xf32, #tpu.memory_space<vmem>> -> memref<8xf32, #tpu.memory_space<vmem>>
      %178 = tpu.memref_slice %arg8[%106, %c7_i32_105] : memref<2x8x!tpu.dma_semaphore, #tpu.memory_space<semaphore_mem>> -> memref<1x1x!tpu.dma_semaphore, #tpu.memory_space<semaphore_mem>>
      %179 = tpu.memref_squeeze %178 : memref<1x1x!tpu.dma_semaphore, #tpu.memory_space<semaphore_mem>> -> memref<!tpu.dma_semaphore, #tpu.memory_space<semaphore_mem>>
      tpu.enqueue_dma source(%175 : memref<8xf32, #tpu.memory_space<any>>) target(%177 : memref<8xf32, #tpu.memory_space<vmem>>) target_semaphore(%179 : memref<!tpu.dma_semaphore, #tpu.memory_space<semaphore_mem>>)
    } else {
    }
    %c2_i32 = arith.constant 2 : i32
    %c0_i32_3 = arith.constant 0 : i32
    %7 = arith.cmpi eq, %c2_i32, %c0_i32_3 : i32
    %c1_i32_4 = arith.constant 1 : i32
    %8 = arith.select %7, %c1_i32_4, %c2_i32 : i32
    %9 = arith.remsi %arg0, %8 : i32
    %c0_i32_5 = arith.constant 0 : i32
    %10 = arith.cmpi ne, %9, %c0_i32_5 : i32
    %c0_i32_6 = arith.constant 0 : i32
    %11 = arith.cmpi slt, %9, %c0_i32_6 : i32
    %c0_i32_7 = arith.constant 0 : i32
    %12 = arith.cmpi slt, %8, %c0_i32_7 : i32
    %13 = arith.xori %11, %12 : i1
    %14 = arith.andi %13, %10 : i1
    %15 = arith.addi %9, %8 : i32
    %16 = arith.select %14, %15, %9 : i32
    %c0_i32_8 = arith.constant 0 : i32
    %c0_i32_9 = arith.constant 0 : i32
    %c0_i32_10 = arith.constant 0 : i32
    %c0_i32_11 = arith.constant 0 : i32
    %17 = tpu.memref_slice %arg5[%c0_i32_8, %c0_i32_11] : memref<64x8xf32, #tpu.memory_space<any>> -> memref<1x8xf32, #tpu.memory_space<any>>
    %18 = tpu.memref_squeeze %17 : memref<1x8xf32, #tpu.memory_space<any>> -> memref<8xf32, #tpu.memory_space<any>>
    %c0_i32_12 = arith.constant 0 : i32
    %19 = tpu.memref_slice %arg7[%16, %c0_i32_9, %c0_i32_12] : memref<2x8x8xf32, #tpu.memory_space<vmem>> -> memref<1x1x8xf32, #tpu.memory_space<vmem>>
    %20 = tpu.memref_squeeze %19 : memref<1x1x8xf32, #tpu.memory_space<vmem>> -> memref<8xf32, #tpu.memory_space<vmem>>
    %21 = tpu.memref_slice %arg8[%16, %c0_i32_10] : memref<2x8x!tpu.dma_semaphore, #tpu.memory_space<semaphore_mem>> -> memref<1x1x!tpu.dma_semaphore, #tpu.memory_space<semaphore_mem>>
    %22 = tpu.memref_squeeze %21 : memref<1x1x!tpu.dma_semaphore, #tpu.memory_space<semaphore_mem>> -> memref<!tpu.dma_semaphore, #tpu.memory_space<semaphore_mem>>
    tpu.wait_dma2 semaphore(%22 : memref<!tpu.dma_semaphore, #tpu.memory_space<semaphore_mem>>) src(%18 : memref<8xf32, #tpu.memory_space<any>>) dst(%20 : memref<8xf32, #tpu.memory_space<vmem>>)
    %c0_i32_13 = arith.constant 0 : i32
    %c1_i32_14 = arith.constant 1 : i32
    %c1_i32_15 = arith.constant 1 : i32
    %c0_i32_16 = arith.constant 0 : i32
    %23 = tpu.memref_slice %arg5[%c0_i32_13, %c0_i32_16] : memref<64x8xf32, #tpu.memory_space<any>> -> memref<1x8xf32, #tpu.memory_space<any>>
    %24 = tpu.memref_squeeze %23 : memref<1x8xf32, #tpu.memory_space<any>> -> memref<8xf32, #tpu.memory_space<any>>
    %c0_i32_17 = arith.constant 0 : i32
    %25 = tpu.memref_slice %arg7[%16, %c1_i32_14, %c0_i32_17] : memref<2x8x8xf32, #tpu.memory_space<vmem>> -> memref<1x1x8xf32, #tpu.memory_space<vmem>>
    %26 = tpu.memref_squeeze %25 : memref<1x1x8xf32, #tpu.memory_space<vmem>> -> memref<8xf32, #tpu.memory_space<vmem>>
    %27 = tpu.memref_slice %arg8[%16, %c1_i32_15] : memref<2x8x!tpu.dma_semaphore, #tpu.memory_space<semaphore_mem>> -> memref<1x1x!tpu.dma_semaphore, #tpu.memory_space<semaphore_mem>>
    %28 = tpu.memref_squeeze %27 : memref<1x1x!tpu.dma_semaphore, #tpu.memory_space<semaphore_mem>> -> memref<!tpu.dma_semaphore, #tpu.memory_space<semaphore_mem>>
    tpu.wait_dma2 semaphore(%28 : memref<!tpu.dma_semaphore, #tpu.memory_space<semaphore_mem>>) src(%24 : memref<8xf32, #tpu.memory_space<any>>) dst(%26 : memref<8xf32, #tpu.memory_space<vmem>>)
    %c0_i32_18 = arith.constant 0 : i32
    %c2_i32_19 = arith.constant 2 : i32
    %c2_i32_20 = arith.constant 2 : i32
    %c0_i32_21 = arith.constant 0 : i32
    %29 = tpu.memref_slice %arg5[%c0_i32_18, %c0_i32_21] : memref<64x8xf32, #tpu.memory_space<any>> -> memref<1x8xf32, #tpu.memory_space<any>>
    %30 = tpu.memref_squeeze %29 : memref<1x8xf32, #tpu.memory_space<any>> -> memref<8xf32, #tpu.memory_space<any>>
    %c0_i32_22 = arith.constant 0 : i32
    %31 = tpu.memref_slice %arg7[%16, %c2_i32_19, %c0_i32_22] : memref<2x8x8xf32, #tpu.memory_space<vmem>> -> memref<1x1x8xf32, #tpu.memory_space<vmem>>
    %32 = tpu.memref_squeeze %31 : memref<1x1x8xf32, #tpu.memory_space<vmem>> -> memref<8xf32, #tpu.memory_space<vmem>>
    %33 = tpu.memref_slice %arg8[%16, %c2_i32_20] : memref<2x8x!tpu.dma_semaphore, #tpu.memory_space<semaphore_mem>> -> memref<1x1x!tpu.dma_semaphore, #tpu.memory_space<semaphore_mem>>
    %34 = tpu.memref_squeeze %33 : memref<1x1x!tpu.dma_semaphore, #tpu.memory_space<semaphore_mem>> -> memref<!tpu.dma_semaphore, #tpu.memory_space<semaphore_mem>>
    tpu.wait_dma2 semaphore(%34 : memref<!tpu.dma_semaphore, #tpu.memory_space<semaphore_mem>>) src(%30 : memref<8xf32, #tpu.memory_space<any>>) dst(%32 : memref<8xf32, #tpu.memory_space<vmem>>)
    %c0_i32_23 = arith.constant 0 : i32
    %c3_i32 = arith.constant 3 : i32
    %c3_i32_24 = arith.constant 3 : i32
    %c0_i32_25 = arith.constant 0 : i32
    %35 = tpu.memref_slice %arg5[%c0_i32_23, %c0_i32_25] : memref<64x8xf32, #tpu.memory_space<any>> -> memref<1x8xf32, #tpu.memory_space<any>>
    %36 = tpu.memref_squeeze %35 : memref<1x8xf32, #tpu.memory_space<any>> -> memref<8xf32, #tpu.memory_space<any>>
    %c0_i32_26 = arith.constant 0 : i32
    %37 = tpu.memref_slice %arg7[%16, %c3_i32, %c0_i32_26] : memref<2x8x8xf32, #tpu.memory_space<vmem>> -> memref<1x1x8xf32, #tpu.memory_space<vmem>>
    %38 = tpu.memref_squeeze %37 : memref<1x1x8xf32, #tpu.memory_space<vmem>> -> memref<8xf32, #tpu.memory_space<vmem>>
    %39 = tpu.memref_slice %arg8[%16, %c3_i32_24] : memref<2x8x!tpu.dma_semaphore, #tpu.memory_space<semaphore_mem>> -> memref<1x1x!tpu.dma_semaphore, #tpu.memory_space<semaphore_mem>>
    %40 = tpu.memref_squeeze %39 : memref<1x1x!tpu.dma_semaphore, #tpu.memory_space<semaphore_mem>> -> memref<!tpu.dma_semaphore, #tpu.memory_space<semaphore_mem>>
    tpu.wait_dma2 semaphore(%40 : memref<!tpu.dma_semaphore, #tpu.memory_space<semaphore_mem>>) src(%36 : memref<8xf32, #tpu.memory_space<any>>) dst(%38 : memref<8xf32, #tpu.memory_space<vmem>>)
    %c0_i32_27 = arith.constant 0 : i32
    %c4_i32 = arith.constant 4 : i32
    %c4_i32_28 = arith.constant 4 : i32
    %c0_i32_29 = arith.constant 0 : i32
    %41 = tpu.memref_slice %arg5[%c0_i32_27, %c0_i32_29] : memref<64x8xf32, #tpu.memory_space<any>> -> memref<1x8xf32, #tpu.memory_space<any>>
    %42 = tpu.memref_squeeze %41 : memref<1x8xf32, #tpu.memory_space<any>> -> memref<8xf32, #tpu.memory_space<any>>
    %c0_i32_30 = arith.constant 0 : i32
    %43 = tpu.memref_slice %arg7[%16, %c4_i32, %c0_i32_30] : memref<2x8x8xf32, #tpu.memory_space<vmem>> -> memref<1x1x8xf32, #tpu.memory_space<vmem>>
    %44 = tpu.memref_squeeze %43 : memref<1x1x8xf32, #tpu.memory_space<vmem>> -> memref<8xf32, #tpu.memory_space<vmem>>
    %45 = tpu.memref_slice %arg8[%16, %c4_i32_28] : memref<2x8x!tpu.dma_semaphore, #tpu.memory_space<semaphore_mem>> -> memref<1x1x!tpu.dma_semaphore, #tpu.memory_space<semaphore_mem>>
    %46 = tpu.memref_squeeze %45 : memref<1x1x!tpu.dma_semaphore, #tpu.memory_space<semaphore_mem>> -> memref<!tpu.dma_semaphore, #tpu.memory_space<semaphore_mem>>
    tpu.wait_dma2 semaphore(%46 : memref<!tpu.dma_semaphore, #tpu.memory_space<semaphore_mem>>) src(%42 : memref<8xf32, #tpu.memory_space<any>>) dst(%44 : memref<8xf32, #tpu.memory_space<vmem>>)
    %c0_i32_31 = arith.constant 0 : i32
    %c5_i32 = arith.constant 5 : i32
    %c5_i32_32 = arith.constant 5 : i32
    %c0_i32_33 = arith.constant 0 : i32
    %47 = tpu.memref_slice %arg5[%c0_i32_31, %c0_i32_33] : memref<64x8xf32, #tpu.memory_space<any>> -> memref<1x8xf32, #tpu.memory_space<any>>
    %48 = tpu.memref_squeeze %47 : memref<1x8xf32, #tpu.memory_space<any>> -> memref<8xf32, #tpu.memory_space<any>>
    %c0_i32_34 = arith.constant 0 : i32
    %49 = tpu.memref_slice %arg7[%16, %c5_i32, %c0_i32_34] : memref<2x8x8xf32, #tpu.memory_space<vmem>> -> memref<1x1x8xf32, #tpu.memory_space<vmem>>
    %50 = tpu.memref_squeeze %49 : memref<1x1x8xf32, #tpu.memory_space<vmem>> -> memref<8xf32, #tpu.memory_space<vmem>>
    %51 = tpu.memref_slice %arg8[%16, %c5_i32_32] : memref<2x8x!tpu.dma_semaphore, #tpu.memory_space<semaphore_mem>> -> memref<1x1x!tpu.dma_semaphore, #tpu.memory_space<semaphore_mem>>
    %52 = tpu.memref_squeeze %51 : memref<1x1x!tpu.dma_semaphore, #tpu.memory_space<semaphore_mem>> -> memref<!tpu.dma_semaphore, #tpu.memory_space<semaphore_mem>>
    tpu.wait_dma2 semaphore(%52 : memref<!tpu.dma_semaphore, #tpu.memory_space<semaphore_mem>>) src(%48 : memref<8xf32, #tpu.memory_space<any>>) dst(%50 : memref<8xf32, #tpu.memory_space<vmem>>)
    %c0_i32_35 = arith.constant 0 : i32
    %c6_i32 = arith.constant 6 : i32
    %c6_i32_36 = arith.constant 6 : i32
    %c0_i32_37 = arith.constant 0 : i32
    %53 = tpu.memref_slice %arg5[%c0_i32_35, %c0_i32_37] : memref<64x8xf32, #tpu.memory_space<any>> -> memref<1x8xf32, #tpu.memory_space<any>>
    %54 = tpu.memref_squeeze %53 : memref<1x8xf32, #tpu.memory_space<any>> -> memref<8xf32, #tpu.memory_space<any>>
    %c0_i32_38 = arith.constant 0 : i32
    %55 = tpu.memref_slice %arg7[%16, %c6_i32, %c0_i32_38] : memref<2x8x8xf32, #tpu.memory_space<vmem>> -> memref<1x1x8xf32, #tpu.memory_space<vmem>>
    %56 = tpu.memref_squeeze %55 : memref<1x1x8xf32, #tpu.memory_space<vmem>> -> memref<8xf32, #tpu.memory_space<vmem>>
    %57 = tpu.memref_slice %arg8[%16, %c6_i32_36] : memref<2x8x!tpu.dma_semaphore, #tpu.memory_space<semaphore_mem>> -> memref<1x1x!tpu.dma_semaphore, #tpu.memory_space<semaphore_mem>>
    %58 = tpu.memref_squeeze %57 : memref<1x1x!tpu.dma_semaphore, #tpu.memory_space<semaphore_mem>> -> memref<!tpu.dma_semaphore, #tpu.memory_space<semaphore_mem>>
    tpu.wait_dma2 semaphore(%58 : memref<!tpu.dma_semaphore, #tpu.memory_space<semaphore_mem>>) src(%54 : memref<8xf32, #tpu.memory_space<any>>) dst(%56 : memref<8xf32, #tpu.memory_space<vmem>>)
    %c0_i32_39 = arith.constant 0 : i32
    %c7_i32 = arith.constant 7 : i32
    %c7_i32_40 = arith.constant 7 : i32
    %c0_i32_41 = arith.constant 0 : i32
    %59 = tpu.memref_slice %arg5[%c0_i32_39, %c0_i32_41] : memref<64x8xf32, #tpu.memory_space<any>> -> memref<1x8xf32, #tpu.memory_space<any>>
    %60 = tpu.memref_squeeze %59 : memref<1x8xf32, #tpu.memory_space<any>> -> memref<8xf32, #tpu.memory_space<any>>
    %c0_i32_42 = arith.constant 0 : i32
    %61 = tpu.memref_slice %arg7[%16, %c7_i32, %c0_i32_42] : memref<2x8x8xf32, #tpu.memory_space<vmem>> -> memref<1x1x8xf32, #tpu.memory_space<vmem>>
    %62 = tpu.memref_squeeze %61 : memref<1x1x8xf32, #tpu.memory_space<vmem>> -> memref<8xf32, #tpu.memory_space<vmem>>
    %63 = tpu.memref_slice %arg8[%16, %c7_i32_40] : memref<2x8x!tpu.dma_semaphore, #tpu.memory_space<semaphore_mem>> -> memref<1x1x!tpu.dma_semaphore, #tpu.memory_space<semaphore_mem>>
    %64 = tpu.memref_squeeze %63 : memref<1x1x!tpu.dma_semaphore, #tpu.memory_space<semaphore_mem>> -> memref<!tpu.dma_semaphore, #tpu.memory_space<semaphore_mem>>
    tpu.wait_dma2 semaphore(%64 : memref<!tpu.dma_semaphore, #tpu.memory_space<semaphore_mem>>) src(%60 : memref<8xf32, #tpu.memory_space<any>>) dst(%62 : memref<8xf32, #tpu.memory_space<vmem>>)
    %65 = tpu.iota {dimensions = array<i32: 1>} : vector<8x8xi32>
    %c0 = arith.constant 0 : index
    %c0_43 = arith.constant 0 : index
    %66 = vector.load %arg3[%c0, %c0_43] : memref<8x4xf32, #tpu.memory_space<vmem>>, vector<8x1xf32>
    %67 = arith.fptosi %66 : vector<8x1xf32> to vector<8x1xi32>
    %68 = vector.broadcast %67 : vector<8x1xi32> to vector<8x8xi32>
    %69 = arith.cmpi eq, %65, %68 : vector<8x8xi32>
    %c0_44 = arith.constant 0 : index
    %c0_45 = arith.constant 0 : index
    %70 = vector.load %arg2[%c0_44, %c0_45] : memref<8x8xf32, #tpu.memory_space<vmem>>, vector<8x8xf32>
    %cst = arith.constant 0.000000e+00 : f32
    %71 = vector.broadcast %cst : f32 to vector<8x8xf32>
    %72 = arith.select %69, %70, %71 : vector<8x8xi1>, vector<8x8xf32>
    %cst_46 = arith.constant dense<0.000000e+00> : vector<8xf32>
    %73 = vector.multi_reduction <add>, %72, %cst_46 [1] : vector<8x8xf32> to vector<8xf32>
    %74 = vector.shape_cast %73 : vector<8xf32> to vector<8x1xf32>
    %75 = arith.index_cast %16 : i32 to index
    %c0_47 = arith.constant 0 : index
    %c0_48 = arith.constant 0 : index
    %76 = vector.load %arg7[%75, %c0_47, %c0_48] : memref<2x8x8xf32, #tpu.memory_space<vmem>>, vector<1x8x8xf32>
    %77 = vector.shape_cast %76 : vector<1x8x8xf32> to vector<8x8xf32>
    %cst_49 = arith.constant 0.000000e+00 : f32
    %78 = vector.broadcast %cst_49 : f32 to vector<8x8xf32>
    %79 = arith.select %69, %77, %78 : vector<8x8xi1>, vector<8x8xf32>
    %cst_50 = arith.constant dense<0.000000e+00> : vector<8xf32>
    %80 = vector.multi_reduction <add>, %79, %cst_50 [1] : vector<8x8xf32> to vector<8xf32>
    %81 = vector.shape_cast %80 : vector<8xf32> to vector<8x1xf32>
    %c0_51 = arith.constant 0 : index
    %c1 = arith.constant 1 : index
    %82 = vector.load %arg3[%c0_51, %c1] : memref<8x4xf32, #tpu.memory_space<vmem>>, vector<8x1xf32>
    %83 = arith.mulf %82, %74 : vector<8x1xf32>
    %c0_52 = arith.constant 0 : index
    %c2 = arith.constant 2 : index
    %84 = vector.load %arg3[%c0_52, %c2] : memref<8x4xf32, #tpu.memory_space<vmem>>, vector<8x1xf32>
    %85 = arith.mulf %84, %81 : vector<8x1xf32>
    %86 = arith.addf %83, %85 : vector<8x1xf32>
    %c0_53 = arith.constant 0 : index
    %c0_54 = arith.constant 0 : index
    %87 = vector.load %arg9[%c0_53, %c0_54] : memref<1x1xf32, #tpu.memory_space<vmem>>, vector<1x1xf32>
    %cst_55 = arith.constant dense<0.000000e+00> : vector<1xf32>
    %88 = vector.multi_reduction <add>, %86, %cst_55 [0] : vector<8x1xf32> to vector<1xf32>
    %89 = vector.shape_cast %88 : vector<1xf32> to vector<1x1xf32>
    %90 = arith.addf %87, %89 : vector<1x1xf32>
    %c0_56 = arith.constant 0 : index
    %c0_57 = arith.constant 0 : index
    %91 = vector.load %arg9[%c0_56, %c0_57] : memref<1x1xf32, #tpu.memory_space<vmem>>, vector<1x1xf32>
    tpu.vector_store %arg9[%c0_56, %c0_57], %90 {strides = array<i32>} : memref<1x1xf32, #tpu.memory_space<vmem>>, vector<1x1xf32>,
    %c0_i32_58 = arith.constant 0 : i32
    %92 = arith.cmpi eq, %arg0, %c0_i32_58 : i32
    %93 = arith.extui %92 : i1 to i32
    %c0_i32_59 = arith.constant 0 : i32
    %94 = arith.cmpi ne, %93, %c0_i32_59 : i32
    scf.if %94 {
      %c0_60 = arith.constant 0 : index
      %c0_61 = arith.constant 0 : index
      %95 = vector.load %arg4[%c0_60, %c0_61] : memref<1x8xf32, #tpu.memory_space<vmem>>, vector<1x8xf32>
      %cst_62 = arith.constant dense<0xFF800000> : vector<1xf32>
      %96 = vector.multi_reduction <maximumf>, %95, %cst_62 [1] : vector<1x8xf32> to vector<1xf32>
      %97 = vector.shape_cast %96 : vector<1xf32> to vector<1x1xf32>
      %98 = vector.broadcast %97 : vector<1x1xf32> to vector<1x8xf32>
      %99 = arith.subf %95, %98 : vector<1x8xf32>
      %100 = math.exp %99 : vector<1x8xf32>
      %cst_63 = arith.constant dense<0.000000e+00> : vector<1xf32>
      %101 = vector.multi_reduction <add>, %100, %cst_63 [1] : vector<1x8xf32> to vector<1xf32>
      %102 = vector.shape_cast %101 : vector<1xf32> to vector<1x1xf32>
      %103 = math.log %102 : vector<1x1xf32>
      %104 = arith.addf %97, %103 : vector<1x1xf32>
      %c0_64 = arith.constant 0 : index
      %c0_65 = arith.constant 0 : index
      %105 = vector.load %arg9[%c0_64, %c0_65] : memref<1x1xf32, #tpu.memory_space<vmem>>, vector<1x1xf32>
      %106 = arith.subf %105, %104 : vector<1x1xf32>
      %cst_66 = arith.constant 0.000000e+00 : f32
      %107 = vector.broadcast %cst_66 : f32 to vector<1x1xf32>
      %108 = arith.subf %107, %106 : vector<1x1xf32>
      %c0_67 = arith.constant 0 : index
      %c0_68 = arith.constant 0 : index
      %109 = vector.load %arg6[%c0_67, %c0_68] : memref<1x1xf32, #tpu.memory_space<vmem>>, vector<1x1xf32>
      tpu.vector_store %arg6[%c0_67, %c0_68], %108 {strides = array<i32>} : memref<1x1xf32, #tpu.memory_space<vmem>>, vector<1x1xf32>,
    } else {
    }
    return
  }
  func.func @transform_0(%arg0: i32, %arg1: memref<16xi32, #tpu.memory_space<smem>>) -> (i32, i32) {
    %c0_i32 = arith.constant 0 : i32
    %c0_i32_0 = arith.constant 0 : i32
    return %arg0, %c0_i32 : i32, i32
  }
  func.func @transform_1(%arg0: i32, %arg1: memref<16xi32, #tpu.memory_space<smem>>) -> (i32, i32) {
    %c0_i32 = arith.constant 0 : i32
    %c0_i32_0 = arith.constant 0 : i32
    return %arg0, %c0_i32 : i32, i32
  }
  func.func @transform_2(%arg0: i32, %arg1: memref<16xi32, #tpu.memory_space<smem>>) -> (i32, i32) {
    %c0_i32 = arith.constant 0 : i32
    %c0_i32_0 = arith.constant 0 : i32
    %c0_i32_1 = arith.constant 0 : i32
    return %c0_i32, %c0_i32_0 : i32, i32
  }
  func.func @transform_4(%arg0: i32, %arg1: memref<16xi32, #tpu.memory_space<smem>>) -> (i32, i32) {
    %c0_i32 = arith.constant 0 : i32
    %c0_i32_0 = arith.constant 0 : i32
    %c0_i32_1 = arith.constant 0 : i32
    return %c0_i32, %c0_i32_0 : i32, i32
  }
}

</mosaic_0001>

<bundles_post_ra>
// kernel: tpu_custom_call.1
= control target key start
LH: loop header
LB: loop body
LE: loop exit
PB: predicated region body
PF: predicated region fallthrough
CT: control target
= control target key end

     0   :  { %s1519_s0 = inlined_call_operand.vmem [shape: s32[16], index: 0, kind: input, shape index: {}]   ;;  %s1520_s1 = inlined_call_operand.vmem [shape: f32[8,8], index: 1, kind: input, shape index: {}]   ;;  %s1521_s2 = inlined_call_operand.vmem [shape: f32[8,4], index: 2, kind: input, shape index: {}]   ;;  %s1522_s3 = inlined_call_operand.vmem [shape: f32[1,8], index: 3, kind: input, shape index: {}]   ;;  %s1523_s4 = inlined_call_operand.vmem [shape: f32[64,8], index: 4, kind: input, shape index: {}]   ;;  %s1524_s5 = inlined_call_operand.hbm [shape: f32[1,1], index: 5, kind: output, shape index: {}]  }
   0x1   :  { %s10_s20 = sshll.u32 %s1519_s0, 4  ;;  %s11_s20 = int_to_ptr.vmem [resolvable:$true] %s10_s20 }
   0x2   :  { %s1376_s21 = scalar_lea.vmem %s11_s20, 16  ;;  %p1381_p1 = scmp.lt.s32.totalorder %s11_s20, %s11_s20 }
   0x3   :  { %p1377_p0 = scmp.ne.s32.totalorder %s11_s20, %s1376_s21  ;;  %p1382_p2 = scmp.lt.s32.totalorder %s1376_s21, %s1376_s21 }
   0x5   :  { %p1383_p3 = por %p1382_p2, %p1381_p1 }
   0x7   :  { %p1384_p4 = pnand %p1383_p3, %p1377_p0 }
   0x9   :  { %1387 = shalt.err (!%p1384_p4)  }
   0xa   :  { %s1430_s22 = smov [#allocation6]  }
   0xb   :  { %13 = dma.vmem_to_smem %s11_s20, 16, %s1430_s22, [#allocation5] }
   0xc   :  { %1410 = dma.done.wait [#allocation5], 16 }
   0xd   :  { %1411 = vsyncadd [#allocation5], 4294967280 }
   0xe   :  { %15 = sfence }
   0xf   :  { %16 = vsyncpa [#allocation8], 0  ;;  %vm27_vm0 = vcmask 0   ;;  %s29_s23 = sld [smem:[#allocation6]]  ;;  %v1431_v0 = vmov 0.0  }
  0x10   :  { %28 = vst.msk [vmem:[#allocation4] sm:$0x1] %vm27_vm0, %v1431_v0 }
  0x15   :  { %s30_s25 = scalar_lea.vmem %s1523_s4, %s29_s23 }
  0x16   :  { %v48_v1 = vld [vmem:[%s30_s25] sm:$0x1] }
  0x17   :  { %49 = vst [vmem:[#allocation2] sm:$0x1] %v48_v1 }
  0x18   :  { %74 = vsyncadd [#allocation3], 16  ;;  %s1332_s26 = sld [smem:[#allocation6 + $0x1]] }
  0x1e   :  { %s76_s29 = scalar_lea.vmem %s1523_s4, %s1332_s26 }
  0x1f   :  { %v96_v2 = vld [vmem:[%s76_s29] sm:$0x1] }
  0x20   :  { %97 = vst [vmem:[#allocation2 + $0x1] sm:$0x1] %v96_v2 }
  0x21   :  { %122 = vsyncadd [#allocation3 + $0x1], 16  ;;  %s1333_s30 = sld [smem:[#allocation6 + $0x2]] }
  0x27   :  { %s124_s8 = scalar_lea.vmem %s1523_s4, %s1333_s30 }
  0x28   :  { %v144_v3 = vld [vmem:[%s124_s8] sm:$0x1] }
  0x29   :  { %145 = vst [vmem:[#allocation2 + $0x2] sm:$0x1] %v144_v3 }
  0x2a   :  { %170 = vsyncadd [#allocation3 + $0x2], 16  ;;  %s1334_s9 = sld [smem:[#allocation6 + $0x3]] }
  0x30   :  { %s172_s12 = scalar_lea.vmem %s1523_s4, %s1334_s9 }
  0x31   :  { %v192_v4 = vld [vmem:[%s172_s12] sm:$0x1] }
  0x32   :  { %193 = vst [vmem:[#allocation2 + $0x3] sm:$0x1] %v192_v4 }
  0x33   :  { %218 = vsyncadd [#allocation3 + $0x3], 16  ;;  %s1335_s13 = sld [smem:[#allocation6 + $0x4]] }
  0x39   :  { %s220_s16 = scalar_lea.vmem %s1523_s4, %s1335_s13 }
  0x3a   :  { %v240_v5 = vld [vmem:[%s220_s16] sm:$0x1] }
  0x3b   :  { %241 = vst [vmem:[#allocation2 + $0x4] sm:$0x1] %v240_v5 }
  0x3c   :  { %266 = vsyncadd [#allocation3 + $0x4], 16  ;;  %s1336_s17 = sld [smem:[#allocation6 + $0x5]] }
  0x42   :  { %s268_s20 = scalar_lea.vmem %s1523_s4, %s1336_s17 }
  0x43   :  { %v288_v6 = vld [vmem:[%s268_s20] sm:$0x1] }
  0x44   :  { %289 = vst [vmem:[#allocation2 + $0x5] sm:$0x1] %v288_v6 }
  0x45   :  { %314 = vsyncadd [#allocation3 + $0x5], 16  ;;  %s1337_s21 = sld [smem:[#allocation6 + $0x6]] }
  0x4b   :  { %s316_s0 = scalar_lea.vmem %s1523_s4, %s1337_s21 }
  0x4c   :  { %v336_v7 = vld [vmem:[%s316_s0] sm:$0x1] }
  0x4d   :  { %337 = vst [vmem:[#allocation2 + $0x6] sm:$0x1] %v336_v7 }
  0x4e   :  { %362 = vsyncadd [#allocation3 + $0x6], 16  ;;  %s1338_s24 = sld [smem:[#allocation6 + $0x7]] }
  0x54   :  { %s364_s27 = scalar_lea.vmem %s1523_s4, %s1338_s24 }
  0x55   :  { %v384_v8 = vld [vmem:[%s364_s27] sm:$0x1] }
  0x56   :  { %385 = vst [vmem:[#allocation2 + $0x7] sm:$0x1] %v384_v8 }
  0x57   :  { %410 = vsyncadd [#allocation3 + $0x7], 16 }
  0x58   :  { %1412 = dma.done.wait [#allocation3], 16 }
  0x59   :  { %1413 = vsyncadd [#allocation3], 4294967280 }
  0x5a   :  { %1414 = dma.done.wait [#allocation3 + $0x1], 16 }
  0x5b   :  { %1415 = vsyncadd [#allocation3 + $0x1], 4294967280 }
  0x5c   :  { %1416 = dma.done.wait [#allocation3 + $0x2], 16 }
  0x5d   :  { %1417 = vsyncadd [#allocation3 + $0x2], 4294967280 }
  0x5e   :  { %1418 = dma.done.wait [#allocation3 + $0x3], 16 }
  0x5f   :  { %1419 = vsyncadd [#allocation3 + $0x3], 4294967280 }
  0x60   :  { %1420 = dma.done.wait [#allocation3 + $0x4], 16 }
  0x61   :  { %1421 = vsyncadd [#allocation3 + $0x4], 4294967280 }
  0x62   :  { %1422 = dma.done.wait [#allocation3 + $0x5], 16 }
  0x63   :  { %1423 = vsyncadd [#allocation3 + $0x5], 4294967280 }
  0x64   :  { %1424 = dma.done.wait [#allocation3 + $0x6], 16 }
  0x65   :  { %1425 = vsyncadd [#allocation3 + $0x6], 4294967280 }
  0x66   :  { %1426 = dma.done.wait [#allocation3 + $0x7], 16 }
  0x67   :  { %1427 = vsyncadd [#allocation3 + $0x7], 4294967280  ;;  %v1432_v9 = vmov 0   ;;  %vm929_vm1 = vcmask 57344   ;;  %v870_v10 = vld [vmem:[%s1521_s2] sm:$0xff]  ;;  %v868_v15 = vlaneseq  ;;  %vm878_vm2 = vcmask 64512  }
  0x68   :  { %1371 = vset.pattern.permute.xlu0 %v1432_v9  ;;  %v928_v11 = vld [vmem:[%s1522_s3] sm:$0x1]  ;;  %v1363_v12 = vtrunc.f32 %v870_v10  ;;  %s1433_s2 = smov 127   ;;  %vm896_vm4 = vcmask 15368   ;;  %v1434_v37 = vmov 1966171168  }
  0x69   :  { %v930_v13 = vsel %vm929_vm1, %v928_v11, -inf  ;;  %v869_v16 = vand.u32 127, %v868_v15  ;;  %v883_v17 = vld [vmem:[#allocation2] sm:$0xff]  ;;  %v906_v38 = vunpack.c.l.s4 %v1434_v37  ;;  %v909_v40 = vshrl.u32 %v868_v15, 7  ;;  %v895_v50 = vld [vmem:[#allocation4] sm:$0x1] }
  0x6a   :  { %931 = vmax.xlane.f32.xlu1 %v930_v13  ;;  %v1364_v14 = vcvt.f32.s32 %v1363_v12  ;;  %v876_v18 = vld [vmem:[%s1520_s1] sm:$0xff]  ;;  %s1435_s1 = smov [#allocation7]  }
  0x6b   :  { %v907_v42 = vunpack.c.0.s8 %v906_v38  ;;  %s952_s3 = sshll.u32 %s1435_s1, 4  ;;  %s953_s3 = int_to_ptr.vmem [resolvable:$true] %s952_s3 }
  0x6c   :  { %873 = vperm.xlu0 %1371, %v1364_v14   ;;  %s1388_s8 = scalar_lea.vmem %s953_s3, 16  ;;  %s1392_s9 = scalar_lea.vmem %s953_s3, 32 }
  0x6d   :  { %v910_v45 = vsub.s32 %v907_v42, %v909_v40  ;;  %p1389_p5 = scmp.ne.s32.totalorder %s953_s3, %s1388_s8  ;;  %p1393_p6 = scmp.lt.s32.totalorder %s953_s3, %s953_s3 }
  0x6e   :  { %p1394_p7 = scmp.lt.s32.totalorder %s1392_s9, %s1388_s8 }
  0x70   :  { %p1395_p8 = por %p1394_p7, %p1393_p6 }
  0x72   :  { %p1396_p9 = pnand %p1395_p8, %p1389_p5 }
  0xeb   :  { %v874_v19 = vpop.permute.xlu0 %873 }
  0xec   :  { %vm875_vm3 = vcmp.eq.s32.totalorder %v869_v16, %v874_v19 }
  0xed   :  { %v884_v20 = vsel %vm875_vm3, %v883_v17, 0.0  ;;  %v877_v21 = vsel %vm875_vm3, %v876_v18, 0.0 }
  0xee   :  { %v885_v22 = vsel %vm878_vm2, %v884_v20, 0.0  ;;  %v879_v23 = vsel %vm878_vm2, %v877_v21, 0.0 }
  0xef   :  { %886 = vadd.xlane.f32.xlu0 %v885_v22  ;;  %880 = vadd.xlane.f32.xlu1 %v879_v23 }
  0xf7   :  { %v932_v26 = vpop.xlane.xlu1 %931 }
  0xf8   :  { %v933_v27 = vsub.f32 %v928_v11, %v932_v26 }
  0xfa   :  { %v934_v28 = vmul.f32 1.442695, %v933_v27 }
  0xfc   :  { %1372 = vpow2.f32 %v934_v28 }
 0x106   :  { %v1373_v29 = vpop.eup %1372 }
 0x107   :  { %v936_v30 = vsel %vm929_vm1, %v1373_v29, 0.0 }
 0x17c   :  { %v887_v24 = vpop.xlane.xlu0 %886  ;;  %v881_v31 = vpop.xlane.xlu1 %880 }
 0x17d   :  { %v889_v25 = vmul.f32 %v887_v24, %v870_v10  ;;  %v888_v32 = vmul.f32 %v881_v31, %v870_v10 }
 0x17f   :  { %891 = vrot.lane.b32.xlu1 %v889_v25, %s1433_s2 }
 0x1a3   :  { %937 = vadd.xlane.f32.xlu1 %v936_v30 }
 0x1f1   :  { %v892_v33 = vpop.permute.xlu1 %891 }
 0x1f2   :  { %v894_v34 = vadd.f32 %v892_v33, %v888_v32 }
 0x1f4   :  { %v897_v35 = vsel %vm896_vm4, %v894_v34, 0.0 }
 0x1f5   :  { %v898_v36 = vrot.slane %v897_v35, 4 }
 0x1f7   :  { %v899_v39 = vadd.f32 %v898_v36, %v897_v35 }
 0x1f9   :  { %v900_v41 = vrot.slane %v899_v39, 2 }
 0x1fb   :  { %v901_v43 = vadd.f32 %v900_v41, %v899_v39 }
 0x1fd   :  { %v902_v44 = vrot.slane %v901_v43, 1 }
 0x1ff   :  { %v903_v46 = vadd.f32 %v902_v44, %v901_v43 }
 0x201   :  { %v911_v47 = vrot.slane %v903_v46, %v910_v45 }
 0x203   :  { %v918_v48 = vrot.slane %v911_v47, %v910_v45 }
 0x205   :  { %919 = vrot.lane.b32.xlu0 %v918_v48, %s1433_s2 }
 0x230   :  { %v938_v49 = vpop.xlane.xlu1 %937 }
 0x231   :  { %1374 = vlog2.f32 %v938_v49 }
 0x23b   :  { %v1375_v53 = vpop.eup %1374 }
 0x23c   :  { %v940_v54 = vmul.f32 0.6931472, %v1375_v53 }
 0x23e   :  { %v941_v55 = vadd.f32 %v940_v54, %v932_v26 }
 0x277   :  { %v920_v51 = vpop.permute.xlu0 %919 }
 0x278   :  { %v922_v52 = vadd.f32 %v920_v51, %v895_v50 }
 0x27a   :  { %924 = vst.msk [vmem:[#allocation4] sm:$0x1] %vm27_vm0, %v922_v52 }
 0x281   :  { %v942_v56 = vld [vmem:[#allocation4] sm:$0x1] }
 0x282   :  { %v943_v57 = vsub.f32 %v942_v56, %v941_v55 }
 0x284   :  { %v944_v58 = vsub.f32 0.0, %v943_v57 }
 0x286   :  { %945 = vst.msk [vmem:[#allocation7] sm:$0x1] %vm27_vm0, %v944_v58 }
 0x287   :  { %1399 = shalt.err (!%p1396_p9)
}
 0x288   :  { %s1400_s12 = scalar_lea.hbm %s1524_s5, 16 }
 0x289   :  { %p1401_p10 = scmp.ne.s32.totalorder %s1524_s5, %s1400_s12  ;;  %p1404_p11 = scmp.lt.u32.totalorder %s1400_s12, %s1524_s5 }
 0x28b   :  { %p1406_p12 = pnand %p1404_p11, %p1401_p10 }
 0x28d   :  { %1409 = shalt.err (!%p1406_p12)
}
 0x28e   :  { %955 = dma.vmem_to_hbm [thread:$0]  %s953_s3, 16, %s1524_s5, [#allocation8]  }
 0x28f   :  { %1428 = dma.done.wait [#allocation8], 16  }
 0x290   :  { %1429 = vsyncadd [#allocation8], 4294967280 }
 0x291   :  { %959 = vsyncpa [#allocation8], 1 }
 0x292   :  { %960 = vsyncmov [#allocation3] }
 0x295   :  { %s961_s19 = vpop.sfrf %960 }
 0x296   :  { %p1347_p13 = scmp.ne.s32.totalorder %s961_s19, 0 }
 0x298   :  { %965 = shalt.err (%p1347_p13)  }
 0x299   :  { %967 = vsyncmov [#allocation3 + $0x1] }
 0x29c   :  { %s968_s20 = vpop.sfrf %967 }
 0x29d   :  { %p1348_p0 = scmp.ne.s32.totalorder %s968_s20, 0 }
 0x29f   :  { %972 = shalt.err (%p1348_p0)  }
 0x2a0   :  { %974 = vsyncmov [#allocation3 + $0x2] }
 0x2a3   :  { %s975_s21 = vpop.sfrf %974 }
 0x2a4   :  { %p1349_p1 = scmp.ne.s32.totalorder %s975_s21, 0 }
 0x2a6   :  { %979 = shalt.err (%p1349_p1)  }
 0x2a7   :  { %981 = vsyncmov [#allocation3 + $0x3] }
 0x2aa   :  { %s982_s22 = vpop.sfrf %981 }
 0x2ab   :  { %p1350_p2 = scmp.ne.s32.totalorder %s982_s22, 0 }
 0x2ad   :  { %986 = shalt.err (%p1350_p2)  }
 0x2ae   :  { %988 = vsyncmov [#allocation3 + $0x4] }
 0x2b1   :  { %s989_s5 = vpop.sfrf %988 }
 0x2b2   :  { %p1351_p3 = scmp.ne.s32.totalorder %s989_s5, 0 }
 0x2b4   :  { %993 = shalt.err (%p1351_p3)  }
 0x2b5   :  { %995 = vsyncmov [#allocation3 + $0x5] }
 0x2b8   :  { %s996_s23 = vpop.sfrf %995 }
 0x2b9   :  { %p1352_p4 = scmp.ne.s32.totalorder %s996_s23, 0 }
 0x2bb   :  { %1000 = shalt.err (%p1352_p4)  }
 0x2bc   :  { %1002 = vsyncmov [#allocation3 + $0x6] }
 0x2bf   :  { %s1003_s0 = vpop.sfrf %1002 }
 0x2c0   :  { %p1353_p5 = scmp.ne.s32.totalorder %s1003_s0, 0 }
 0x2c2   :  { %1007 = shalt.err (%p1353_p5)  }
 0x2c3   :  { %1009 = vsyncmov [#allocation3 + $0x7] }
 0x2c6   :  { %s1010_s24 = vpop.sfrf %1009 }
 0x2c7   :  { %p1354_p6 = scmp.ne.s32.totalorder %s1010_s24, 0 }
 0x2c9   :  { %1014 = shalt.err (%p1354_p6)  }
 0x2ca   :  { %1016 = vsyncmov [#allocation3 + $0x8] }
 0x2cd   :  { %s1017_s25 = vpop.sfrf %1016 }
 0x2ce   :  { %p1355_p7 = scmp.ne.s32.totalorder %s1017_s25, 0 }
 0x2d0   :  { %1021 = shalt.err (%p1355_p7)  }
 0x2d1   :  { %1023 = vsyncmov [#allocation3 + $0x9] }
 0x2d4   :  { %s1024_s26 = vpop.sfrf %1023 }
 0x2d5   :  { %p1356_p8 = scmp.ne.s32.totalorder %s1024_s26, 0 }
 0x2d7   :  { %1028 = shalt.err (%p1356_p8)  }
 0x2d8   :  { %1030 = vsyncmov [#allocation3 + $0xa] }
 0x2db   :  { %s1031_s27 = vpop.sfrf %1030 }
 0x2dc   :  { %p1357_p9 = scmp.ne.s32.totalorder %s1031_s27, 0 }
 0x2de   :  { %1035 = shalt.err (%p1357_p9)  }
 0x2df   :  { %1037 = vsyncmov [#allocation3 + $0xb] }
 0x2e2   :  { %s1038_s4 = vpop.sfrf %1037 }
 0x2e3   :  { %p1358_p10 = scmp.ne.s32.totalorder %s1038_s4, 0 }
 0x2e5   :  { %1042 = shalt.err (%p1358_p10)  }
 0x2e6   :  { %1044 = vsyncmov [#allocation3 + $0xc] }
 0x2e9   :  { %s1045_s28 = vpop.sfrf %1044 }
 0x2ea   :  { %p1359_p11 = scmp.ne.s32.totalorder %s1045_s28, 0 }
 0x2ec   :  { %1049 = shalt.err (%p1359_p11)  }
 0x2ed   :  { %1051 = vsyncmov [#allocation3 + $0xd] }
 0x2f0   :  { %s1052_s29 = vpop.sfrf %1051 }
 0x2f1   :  { %p1360_p12 = scmp.ne.s32.totalorder %s1052_s29, 0 }
 0x2f3   :  { %1056 = shalt.err (%p1360_p12)  }
 0x2f4   :  { %1058 = vsyncmov [#allocation3 + $0xe] }
 0x2f7   :  { %s1059_s30 = vpop.sfrf %1058 }
 0x2f8   :  { %p1361_p13 = scmp.ne.s32.totalorder %s1059_s30, 0 }
 0x2fa   :  { %1063 = shalt.err (%p1361_p13)  }
 0x2fb   :  { %1065 = vsyncmov [#allocation3 + $0xf] }
 0x2fe   :  { %s1066_s6 = vpop.sfrf %1065 }
 0x2ff   :  { %p1362_p0 = scmp.ne.s32.totalorder %s1066_s6, 0 }
 0x301   :  { %1070 = shalt.err (%p1362_p0)  }

</bundles_post_ra>
